<compile_context>
chip_gen: v7x
topology: tpu7x:2x2x1
jax: 0.10.0
libtpu: 0.0.40
codegen_flags: <defaults>
</compile_context>

<pallas_src>
import jax
import jax.numpy as jnp
from jax.experimental import pallas as pl
from jax.experimental.pallas import tpu as pltpu


def _domain_disc_kernel(x_ref, w1_ref, b1_ref, w2_ref, b2_ref, o_ref, acc_ref):
    # x_ref:  (TB, SC*F)  flattened (seq-chunk, features) slab, lane-dense
    # w1_ref: (SC*F, H)   matching chunk of tile(w1,(S,1))/S
    # b1_ref: (1, H)      w2_ref: (H, 128)   b2_ref: (1, 128)
    # o_ref:  (TB, 128)   acc_ref: (TB, H) f32 scratch (partial mean@W1)
    k = pl.program_id(1)

    @pl.when(k == 0)
    def _():
        acc_ref[...] = jnp.zeros_like(acc_ref)

    # Fused "mean over S then Linear(F->H)": summing x_chunk @ (w1/S) chunks over
    # the K grid axis reproduces mean(x, axis=1) @ W1 exactly (no XLU reduce).
    acc_ref[...] += jnp.dot(x_ref[...], w1_ref[...],
                            preferred_element_type=jnp.float32)

    @pl.when(k == pl.num_programs(1) - 1)
    def _():
        h = jnp.maximum(acc_ref[...] + b1_ref[...], 0.0)            # Linear1 + ReLU
        y = jnp.dot(h, w2_ref[...], preferred_element_type=jnp.float32) + b2_ref[...]
        o_ref[...] = jax.nn.sigmoid(y).astype(o_ref.dtype)          # lane-dense store


def _vmem_budget_bytes():
    """Generation-aware VMEM budget (v5e/v6e: 128 MiB, v7x: 64 MiB physical)."""
    cap = None
    try:
        cap = int(getattr(pltpu.get_tpu_info(), "vmem_capacity_bytes"))
    except Exception:
        cap = None
    if cap is None:
        kind = ""
        try:
            kind = jax.devices()[0].device_kind.lower()
        except Exception:
            pass
        cap = 64 * 1024 * 1024 if "v7" in kind else 128 * 1024 * 1024
    return int(cap * 3 // 4)  # ~25% headroom for compiler-internal scratch


def domain_discriminator(x, w1, b1, w2, b2, *, target_x_tile_bytes=4 * 1024 * 1024):
    """x: (B, S, F); weights stored [in, out]. Returns (B, 2) f32 == PyTorch forward."""
    B, S, F = x.shape
    H = w1.shape[1]
    O = w2.shape[1]
    O_pad = 128  # lane-dense output width; extra columns sliced off below

    # Fold the sequence mean into the first matmul (lane-dense x DMA, no XLU reduce).
    x2 = x.reshape(B, S * F)                                   # free, contiguous
    w1_rep = (jnp.tile(w1, (S, 1)) / jnp.asarray(S, w1.dtype)).astype(w1.dtype)
    b1p = b1.reshape(1, H)
    w2p = jnp.zeros((H, O_pad), w2.dtype).at[:, :O].set(w2)
    b2p = jnp.zeros((1, O_pad), b2.dtype).at[0, :O].set(b2)

    # ---------------- tile sizing (generation-aware) ----------------
    vmem_budget = _vmem_budget_bytes()
    x_bytes = jnp.dtype(x.dtype).itemsize      # bf16 input also accepted (halves HBM read)
    w_bytes = jnp.dtype(w1.dtype).itemsize

    row_bytes = S * F * x_bytes
    TB = max(8, (target_x_tile_bytes // row_bytes) // 8 * 8)   # ~2-8 MiB of x per step
    if B >= 16:
        # guarantee >= 2 batch tiles so both v7x TensorCores are fed
        TB = min(TB, max(8, (((B + 1) // 2) + 7) // 8 * 8))
    TB = min(TB, B)   # block == full batch dim when B is small / not a multiple of 8

    def _fits(tb, sc):
        kc = sc * F
        x_tile = tb * kc * x_bytes
        w1_tile = kc * H * w_bytes
        out_tile = tb * O_pad * 4
        acc = tb * H * 4
        resident = H * w_bytes + H * O_pad * w_bytes + O_pad * w_bytes
        # double-buffered streamed operands + resident weights + scratch
        return (2 * x_tile + 2 * w1_tile + 2 * out_tile + acc + 2 * resident) <= vmem_budget

    # Sequence (K) chunking: only when the full-S fused tile would blow VMEM
    # (needed for very long S, first on v7x). Chunks must divide S and keep the
    # x block lane-aligned (KC % 128 == 0); SC == S is always legal.
    SC = S
    if not _fits(TB, SC):
        for cand in range(S - 1, 0, -1):
            if S % cand == 0 and (cand * F) % 128 == 0 and _fits(TB, cand):
                SC = cand
                break
        else:
            while not _fits(TB, SC) and TB > 8:   # last resort: shrink batch tile
                TB = max(8, ((TB // 2) + 7) // 8 * 8)
    num_k = S // SC
    KC = SC * F

    grid = (pl.cdiv(B, TB), num_k)   # no jnp.pad of x: ragged last batch tile is fine
                                     # (row-independent compute; OOB stores masked)

    out = pl.pallas_call(
        _domain_disc_kernel,
        out_shape=jax.ShapeDtypeStruct((B, O_pad), jnp.float32),
        grid_spec=pltpu.PrefetchScalarGridSpec(
            num_scalar_prefetch=0,
            grid=grid,
            in_specs=[
                pl.BlockSpec((TB, KC), lambda i, k: (i, k)),     # streamed x slab
                pl.BlockSpec((KC, H), lambda i, k: (k, 0)),      # W1_rep chunk
                pl.BlockSpec((1, H), lambda i, k: (0, 0)),       # resident
                pl.BlockSpec((H, O_pad), lambda i, k: (0, 0)),   # resident
                pl.BlockSpec((1, O_pad), lambda i, k: (0, 0)),   # resident
            ],
            out_specs=pl.BlockSpec((TB, O_pad), lambda i, k: (i, 0)),
            scratch_shapes=[pltpu.VMEM((TB, H), jnp.float32)],
        ),
        compiler_params=pltpu.CompilerParams(
            dimension_semantics=("parallel", "arbitrary"),
            vmem_limit_bytes=vmem_budget,
        ),
    )(x2, w1_rep, b1p, w2p, b2p)

    return out[:, :O]   # drop the zero-padded output columns


def init_params(key, in_features=64, hidden=128, out=2):
    """Deterministic init mimicking PyTorch nn.Linear default (Kaiming-uniform)."""
    k1, k2, k3, k4 = jax.random.split(key, 4)
    bound1 = 1.0 / jnp.sqrt(in_features)
    bound2 = 1.0 / jnp.sqrt(hidden)
    # stored as [in, out] (transposed vs. PyTorch [out, in]) for x @ W
    w1 = jax.random.uniform(k1, (in_features, hidden), jnp.float32, -bound1, bound1)
    b1 = jax.random.uniform(k2, (hidden,), jnp.float32, -bound1, bound1)
    w2 = jax.random.uniform(k3, (hidden, out), jnp.float32, -bound2, bound2)
    b2 = jax.random.uniform(k4, (out,), jnp.float32, -bound2, bound2)
    return w1, b1, w2, b2


if __name__ == "__main__":
    key = jax.random.PRNGKey(0)
    kx, kp = jax.random.split(key)

    B, S, F = 2, 8, 64          # in_features = 64 per module default
    x = jax.random.normal(kx, (B, S, F), dtype=jnp.float32)
    w1, b1, w2, b2 = init_params(kp, in_features=F)

    out = domain_discriminator(x, w1, b1, w2, b2)
    out = jax.block_until_ready(out)

    # Pure-JAX reference check
    xm = x.mean(axis=1)
    ref = jax.nn.sigmoid(jnp.maximum(xm @ w1 + b1, 0.0) @ w2 + b2)
    assert out.shape == (B, 2)
    assert jnp.allclose(out, ref, atol=1e-5, rtol=1e-5)

    print("KERNEL_OK")
</pallas_src>

<mosaic_0001>
module attributes {stable_mosaic.version = 11 : i64} {
  func.func @_domain_disc_kernel(%arg0: i32, %arg1: i32, %arg2: memref<2x512xf32, #tpu.memory_space<vmem>>, %arg3: memref<512x128xf32, #tpu.memory_space<vmem>>, %arg4: memref<1x128xf32, #tpu.memory_space<vmem>>, %arg5: memref<128x128xf32, #tpu.memory_space<vmem>>, %arg6: memref<1x128xf32, #tpu.memory_space<vmem>>, %arg7: memref<2x128xf32, #tpu.memory_space<vmem>>, %arg8: memref<2x128xf32, #tpu.memory_space<vmem>>) attributes {dimension_semantics = [#tpu.dimension_semantics<parallel>, #tpu.dimension_semantics<arbitrary>], iteration_bounds = array<i64: 1, 1>, scalar_prefetch = 0 : i64, scratch_operands = 1 : i64, tpu.core_type = #tpu.core_type<tc>, window_params = [{transform_indices = @transform_0, window_bounds = array<i64: 2, 512>}, {transform_indices = @transform_1, window_bounds = array<i64: 512, 128>}, {pipeline_mode = #tpu.pipeline_mode<synchronous>, transform_indices = @transform_2, window_bounds = array<i64: 1, 128>}, {pipeline_mode = #tpu.pipeline_mode<synchronous>, transform_indices = @transform_3, window_bounds = array<i64: 128, 128>}, {pipeline_mode = #tpu.pipeline_mode<synchronous>, transform_indices = @transform_4, window_bounds = array<i64: 1, 128>}, {transform_indices = @transform_5, window_bounds = array<i64: 2, 128>}]} {
    %c0_i32 = arith.constant 0 : i32
    %0 = arith.cmpi eq, %arg1, %c0_i32 : i32
    %1 = arith.extui %0 : i1 to i32
    %c0_i32_0 = arith.constant 0 : i32
    %2 = arith.cmpi ne, %1, %c0_i32_0 : i32
    scf.if %2 {
      %cst_10 = arith.constant 0.000000e+00 : f32
      %12 = vector.broadcast %cst_10 : f32 to vector<2x128xf32>
      %c0_11 = arith.constant 0 : index
      %c0_12 = arith.constant 0 : index
      %13 = vector.load %arg8[%c0_11, %c0_12] : memref<2x128xf32, #tpu.memory_space<vmem>>, vector<2x128xf32>
      tpu.vector_store %arg8[%c0_11, %c0_12], %12 {strides = array<i32>} : memref<2x128xf32, #tpu.memory_space<vmem>>, vector<2x128xf32>,
    } else {
    }
    %c0 = arith.constant 0 : index
    %c0_1 = arith.constant 0 : index
    %3 = vector.load %arg8[%c0, %c0_1] : memref<2x128xf32, #tpu.memory_space<vmem>>, vector<2x128xf32>
    %c0_2 = arith.constant 0 : index
    %c0_3 = arith.constant 0 : index
    %4 = vector.load %arg2[%c0_2, %c0_3] : memref<2x512xf32, #tpu.memory_space<vmem>>, vector<2x512xf32>
    %c0_4 = arith.constant 0 : index
    %c0_5 = arith.constant 0 : index
    %5 = vector.load %arg3[%c0_4, %c0_5] : memref<512x128xf32, #tpu.memory_space<vmem>>, vector<512x128xf32>
    %cst = arith.constant dense<0.000000e+00> : vector<2x128xf32>
    %6 = tpu.matmul %4, %5, %cst {dimension_numbers = #tpu.dot_dimension_numbers<[1], [0], [0], [1], [0, 0, 1, 1], [], []>} : vector<2x512xf32>, vector<512x128xf32>, vector<2x128xf32> -> vector<2x128xf32>
    %7 = arith.addf %3, %6 : vector<2x128xf32>
    %c0_6 = arith.constant 0 : index
    %c0_7 = arith.constant 0 : index
    %8 = vector.load %arg8[%c0_6, %c0_7] : memref<2x128xf32, #tpu.memory_space<vmem>>, vector<2x128xf32>
    tpu.vector_store %arg8[%c0_6, %c0_7], %7 {strides = array<i32>} : memref<2x128xf32, #tpu.memory_space<vmem>>, vector<2x128xf32>,
    %c0_i32_8 = arith.constant 0 : i32
    %9 = arith.cmpi eq, %arg1, %c0_i32_8 : i32
    %10 = arith.extui %9 : i1 to i32
    %c0_i32_9 = arith.constant 0 : i32
    %11 = arith.cmpi ne, %10, %c0_i32_9 : i32
    scf.if %11 {
      %c0_10 = arith.constant 0 : index
      %c0_11 = arith.constant 0 : index
      %12 = vector.load %arg8[%c0_10, %c0_11] : memref<2x128xf32, #tpu.memory_space<vmem>>, vector<2x128xf32>
      %c0_12 = arith.constant 0 : index
      %c0_13 = arith.constant 0 : index
      %13 = vector.load %arg4[%c0_12, %c0_13] : memref<1x128xf32, #tpu.memory_space<vmem>>, vector<1x128xf32>
      %14 = vector.broadcast %13 : vector<1x128xf32> to vector<2x128xf32>
      %15 = arith.addf %12, %14 : vector<2x128xf32>
      %cst_14 = arith.constant 0.000000e+00 : f32
      %16 = vector.broadcast %cst_14 : f32 to vector<2x128xf32>
      %17 = arith.maximumf %15, %16 : vector<2x128xf32>
      %c0_15 = arith.constant 0 : index
      %c0_16 = arith.constant 0 : index
      %18 = vector.load %arg5[%c0_15, %c0_16] : memref<128x128xf32, #tpu.memory_space<vmem>>, vector<128x128xf32>
      %cst_17 = arith.constant dense<0.000000e+00> : vector<2x128xf32>
      %19 = tpu.matmul %17, %18, %cst_17 {dimension_numbers = #tpu.dot_dimension_numbers<[1], [0], [0], [1], [0, 0, 1, 1], [], []>} : vector<2x128xf32>, vector<128x128xf32>, vector<2x128xf32> -> vector<2x128xf32>
      %c0_18 = arith.constant 0 : index
      %c0_19 = arith.constant 0 : index
      %20 = vector.load %arg6[%c0_18, %c0_19] : memref<1x128xf32, #tpu.memory_space<vmem>>, vector<1x128xf32>
      %21 = vector.broadcast %20 : vector<1x128xf32> to vector<2x128xf32>
      %22 = arith.addf %19, %21 : vector<2x128xf32>
      %23 = arith.negf %22 : vector<2x128xf32>
      %24 = math.exp %23 : vector<2x128xf32>
      %cst_20 = arith.constant 1.000000e+00 : f32
      %25 = vector.broadcast %cst_20 : f32 to vector<2x128xf32>
      %26 = arith.addf %25, %24 : vector<2x128xf32>
      %27 = arith.divf %25, %26 : vector<2x128xf32>
      %c0_21 = arith.constant 0 : index
      %c0_22 = arith.constant 0 : index
      %28 = vector.load %arg7[%c0_21, %c0_22] : memref<2x128xf32, #tpu.memory_space<vmem>>, vector<2x128xf32>
      tpu.vector_store %arg7[%c0_21, %c0_22], %27 {strides = array<i32>} : memref<2x128xf32, #tpu.memory_space<vmem>>, vector<2x128xf32>,
    } else {
    }
    return
  }
  func.func @transform_0(%arg0: i32, %arg1: i32) -> (i32, i32) {
    %c0_i32 = arith.constant 0 : i32
    return %arg0, %arg1 : i32, i32
  }
  func.func @transform_1(%arg0: i32, %arg1: i32) -> (i32, i32) {
    %c0_i32 = arith.constant 0 : i32
    %c0_i32_0 = arith.constant 0 : i32
    return %arg1, %c0_i32 : i32, i32
  }
  func.func @transform_2(%arg0: i32, %arg1: i32) -> (i32, i32) {
    %c0_i32 = arith.constant 0 : i32
    %c0_i32_0 = arith.constant 0 : i32
    %c0_i32_1 = arith.constant 0 : i32
    return %c0_i32, %c0_i32_0 : i32, i32
  }
  func.func @transform_3(%arg0: i32, %arg1: i32) -> (i32, i32) {
    %c0_i32 = arith.constant 0 : i32
    %c0_i32_0 = arith.constant 0 : i32
    %c0_i32_1 = arith.constant 0 : i32
    return %c0_i32, %c0_i32_0 : i32, i32
  }
  func.func @transform_4(%arg0: i32, %arg1: i32) -> (i32, i32) {
    %c0_i32 = arith.constant 0 : i32
    %c0_i32_0 = arith.constant 0 : i32
    %c0_i32_1 = arith.constant 0 : i32
    return %c0_i32, %c0_i32_0 : i32, i32
  }
  func.func @transform_5(%arg0: i32, %arg1: i32) -> (i32, i32) {
    %c0_i32 = arith.constant 0 : i32
    %c0_i32_0 = arith.constant 0 : i32
    return %arg0, %c0_i32 : i32, i32
  }
}

</mosaic_0001>

<bundles_post_ra>
// kernel: tpu_custom_call.1
= control target key start
LH: loop header
LB: loop body
LE: loop exit
PB: predicated region body
PF: predicated region fallthrough
CT: control target
= control target key end

     0   :  { %10 = vsyncpa [#allocation4], 0  ;;  %s932_s0 = inlined_call_operand.hbm [shape: f32[2,512], index: 0, kind: input, shape index: {}]   ;;  %s933_s1 = inlined_call_operand.hbm [shape: f32[512,128], index: 1, kind: input, shape index: {}]   ;;  %s934_s2 = inlined_call_operand.hbm [shape: f32[1,128], index: 2, kind: input, shape index: {}]   ;;  %s935_s3 = inlined_call_operand.hbm [shape: f32[128,128], index: 3, kind: input, shape index: {}]   ;;  %s936_s4 = inlined_call_operand.hbm [shape: f32[1,128], index: 4, kind: input, shape index: {}]   ;;  %s937_s5 = inlined_call_operand.hbm [shape: f32[2,128], index: 5, kind: output, shape index: {}]  }
   0x1   :  { %11 = vsyncpa [#allocation7], 0 }
   0x2   :  { %12 = vsyncpa [#allocation10], 0 }
   0x3   :  { %13 = vsyncpa [#allocation5], 0  ;;  %s818_s18 = smov [#allocation6]   ;;  %s678_s22 = scalar_lea.hbm %s933_s1, 8192 }
   0x4   :  { %s29_s19 = sshll.u32 %s818_s18, 4  ;;  %p679_p0 = scmp.ne.s32.totalorder %s933_s1, %s678_s22  ;;  %s30_s19 = int_to_ptr.vmem [resolvable:$true] %s29_s19 }
   0x5   :  { %p682_p1 = scmp.lt.u32.totalorder %s678_s22, %s933_s1 }
   0x7   :  { %p684_p2 = pnand %p682_p1, %p679_p0 }
   0x9   :  { %687 = shalt.err (!%p684_p2)
}
   0xa   :  { %s688_s27 = scalar_lea.vmem %s30_s19, 8192  ;;  %p693_p4 = scmp.lt.s32.totalorder %s30_s19, %s30_s19 }
   0xb   :  { %p689_p3 = scmp.ne.s32.totalorder %s30_s19, %s688_s27  ;;  %p694_p5 = scmp.lt.s32.totalorder %s688_s27, %s688_s27 }
   0xd   :  { %p695_p6 = por %p694_p5, %p693_p4 }
   0xf   :  { %p696_p7 = pnand %p695_p6, %p689_p3 }
  0x11   :  { %699 = shalt.err (!%p696_p7)
}
  0x12   :  { %s819_s28 = smov 128   ;;  %s820_s29 = smov 8  }
  0x13   :  { %35 = dma.hbm_to_vmem [thread:$0]  %s933_s1, 8192, %s30_s19, [#allocation7], %s819_s28, %s819_s28, %s820_s29  }
  0x14   :  { %s821_s7 = smov [#allocation9]   ;;  %s822_s9 = smov [#allocation3]  }
  0x15   :  { %s51_s8 = sshll.u32 %s821_s7, 4  ;;  %s20_s10 = sshll.u32 %s822_s9, 4  ;;  %s52_s8 = int_to_ptr.vmem [resolvable:$true] %s51_s8  ;;  %s21_s10 = int_to_ptr.vmem [resolvable:$true] %s20_s10 }
  0x16   :  { %s700_s13 = scalar_lea.hbm %s935_s3, 2048 }
  0x17   :  { %p701_p8 = scmp.ne.s32.totalorder %s935_s3, %s700_s13  ;;  %p704_p9 = scmp.lt.u32.totalorder %s700_s13, %s935_s3 }
  0x19   :  { %p706_p10 = pnand %p704_p9, %p701_p8 }
  0x1b   :  { %709 = shalt.err (!%p706_p10)
}
  0x1c   :  { %s710_s1 = scalar_lea.vmem %s52_s8, 2048  ;;  %p715_p12 = scmp.lt.s32.totalorder %s52_s8, %s52_s8 }
  0x1d   :  { %p711_p11 = scmp.ne.s32.totalorder %s52_s8, %s710_s1  ;;  %p716_p13 = scmp.lt.s32.totalorder %s710_s1, %s710_s1 }
  0x1f   :  { %p717_p0 = por %p716_p13, %p715_p12 }
  0x21   :  { %p718_p1 = pnand %p717_p0, %p711_p11 }
  0x23   :  { %721 = shalt.err (!%p718_p1)
}
  0x24   :  { %57 = dma.hbm_to_vmem [thread:$0]  %s935_s3, 2048, %s52_s8, [#allocation10], %s819_s28, %s819_s28, %s820_s29  }
  0x25   :  { %s722_s22 = scalar_lea.hbm %s932_s0, 128 }
  0x26   :  { %p723_p2 = scmp.ne.s32.totalorder %s932_s0, %s722_s22  ;;  %p726_p3 = scmp.lt.u32.totalorder %s722_s22, %s932_s0 }
  0x28   :  { %p728_p4 = pnand %p726_p3, %p723_p2 }
  0x2a   :  { %731 = shalt.err (!%p728_p4)
}
  0x2b   :  { %s732_s27 = scalar_lea.vmem %s21_s10, 128  ;;  %p737_p6 = scmp.lt.s32.totalorder %s21_s10, %s21_s10 }
  0x2c   :  { %p733_p5 = scmp.ne.s32.totalorder %s21_s10, %s732_s27  ;;  %p738_p7 = scmp.lt.s32.totalorder %s732_s27, %s732_s27 }
  0x2e   :  { %p739_p8 = por %p738_p7, %p737_p6 }
  0x30   :  { %p740_p9 = pnand %p739_p8, %p733_p5 }
  0x32   :  { %743 = shalt.err (!%p740_p9)
}
  0x33   :  { %23 = dma.hbm_to_vmem [thread:$0]  %s932_s0, 128, %s21_s10, [#allocation4]  }
  0x34   :  { %s823_s29 = smov [#allocation8]   ;;  %s824_s6 = smov [#allocation11]  }
  0x35   :  { %s42_s30 = sshll.u32 %s823_s29, 4  ;;  %s64_s7 = sshll.u32 %s824_s6, 4  ;;  %s43_s30 = int_to_ptr.vmem [resolvable:$true] %s42_s30  ;;  %s65_s7 = int_to_ptr.vmem [resolvable:$true] %s64_s7 }
  0x36   :  { %s744_s11 = scalar_lea.hbm %s934_s2, 16 }
  0x37   :  { %p745_p10 = scmp.ne.s32.totalorder %s934_s2, %s744_s11  ;;  %p748_p11 = scmp.lt.u32.totalorder %s744_s11, %s934_s2 }
  0x39   :  { %p750_p12 = pnand %p748_p11, %p745_p10 }
  0x3b   :  { %753 = shalt.err (!%p750_p12)
}
  0x3c   :  { %s754_s0 = scalar_lea.vmem %s43_s30, 16  ;;  %s758_s10 = scalar_lea.vmem %s43_s30, 32 }
  0x3d   :  { %p755_p13 = scmp.ne.s32.totalorder %s43_s30, %s754_s0  ;;  %p759_p0 = scmp.lt.s32.totalorder %s43_s30, %s43_s30 }
  0x3e   :  { %p760_p1 = scmp.lt.s32.totalorder %s758_s10, %s754_s0 }
  0x40   :  { %p761_p2 = por %p760_p1, %p759_p0 }
  0x42   :  { %p762_p3 = pnand %p761_p2, %p755_p13 }
  0x44   :  { %765 = shalt.err (!%p762_p3)
}
  0x45   :  { %45 = dma.hbm_to_vmem [thread:$0]  %s934_s2, 16, %s43_s30, [#allocation7]  }
  0x46   :  { %s766_s19 = scalar_lea.hbm %s936_s4, 16 }
  0x47   :  { %p767_p4 = scmp.ne.s32.totalorder %s936_s4, %s766_s19  ;;  %p770_p5 = scmp.lt.u32.totalorder %s766_s19, %s936_s4 }
  0x49   :  { %p772_p6 = pnand %p770_p5, %p767_p4 }
  0x4b   :  { %775 = shalt.err (!%p772_p6)
}
  0x4c   :  { %s776_s24 = scalar_lea.vmem %s65_s7, 16  ;;  %s780_s25 = scalar_lea.vmem %s65_s7, 32 }
  0x4d   :  { %p777_p7 = scmp.ne.s32.totalorder %s65_s7, %s776_s24  ;;  %p781_p8 = scmp.lt.s32.totalorder %s65_s7, %s65_s7 }
  0x4e   :  { %p782_p9 = scmp.lt.s32.totalorder %s780_s25, %s776_s24 }
  0x50   :  { %p783_p10 = por %p782_p9, %p781_p8 }
  0x52   :  { %p784_p11 = pnand %p783_p10, %p777_p7 }
  0x54   :  { %787 = shalt.err (!%p784_p11)
}
  0x55   :  { %67 = dma.hbm_to_vmem [thread:$0]  %s936_s4, 16, %s65_s7, [#allocation10]  }
  0x56   :  { %810 = dma.done.wait [#allocation4], 128  }
  0x57   :  { %811 = vsyncadd [#allocation4], 4294967168 }
  0x58   :  { %812 = dma.done.wait [#allocation7], 8208  }
  0x59   :  { %813 = vsyncadd [#allocation7], 4294959088 }
  0x5a   :  { %814 = dma.done.wait [#allocation10], 2064  }
  0x5b   :  { %815 = vsyncadd [#allocation10], 4294965232  ;;  %v106_v0 = vld [vmem:[#allocation6 + $0x80] sm:$0xff]  ;;  %v107_v1 = vld [vmem:[#allocation6 + $0x88] sm:$0xff]  ;;  %v825_v47 = vmov 1983009808   ;;  %v159_v49 = vlaneseq }
  0x5c   :  { %v138_v2 = vld [vmem:[#allocation6 + $0x180] sm:$0xff]  ;;  %v573_v3 = vpack.c.bf16 %v107_v1, %v106_v0  ;;  %v139_v4 = vld [vmem:[#allocation6 + $0x188] sm:$0xff]  ;;  %v108_v11 = vld [vmem:[#allocation6 + $0x90] sm:$0xff]  ;;  %v157_v48 = vunpack.c.l.s4 %v825_v47  ;;  %v826_v47 = vmov 0.0|0.0   ;;  %vm828_vm0 = vmmov 0   ;;  %s829_s4 = smov [#allocation12]  }
  0x5d   :  { %v90_v5 = vld [vmem:[#allocation6] sm:$0xff]  ;;  %v91_v6 = vld [vmem:[#allocation6 + $0x8] sm:$0xff]  ;;  %v605_v7 = vpack.c.bf16 %v139_v4, %v138_v2  ;;  %v109_v13 = vld [vmem:[#allocation6 + $0x98] sm:$0xff]  ;;  %v160_v0 = vshrl.u32 %v159_v49, 7  ;;  %s437_s27 = sshll.u32 %s829_s4, 4  ;;  %s438_s27 = int_to_ptr.vmem [resolvable:$true] %s437_s27 }
  0x5e   :  { %v575_v8 = vpack.c.bf16 %v91_v6, %v90_v5  ;;  %v122_v9 = vld [vmem:[#allocation6 + $0x100] sm:$0xff]  ;;  %v123_v10 = vld [vmem:[#allocation6 + $0x108] sm:$0xff]  ;;  %574 = vmatprep.subr.bf16.mxu0 %v573_v3  ;;  %v140_v14 = vld [vmem:[#allocation6 + $0x190] sm:$0xff]  ;;  %v577_v16 = vpack.c.bf16 %v109_v13, %v108_v11  ;;  %v158_v63 = vunpack.c.0.s8 %v157_v48  ;;  %s788_s3 = scalar_lea.vmem %s438_s27, 32  ;;  %p793_p13 = scmp.lt.s32.totalorder %s438_s27, %s438_s27 }
  0x5f   :  { %v607_v12 = vpack.c.bf16 %v123_v10, %v122_v9  ;;  %v141_v15 = vld [vmem:[#allocation6 + $0x198] sm:$0xff]  ;;  %606 = vmatprep.subr.bf16.mxu1 %v605_v7  ;;  %v92_v18 = vld [vmem:[#allocation6 + $0x10] sm:$0xff]  ;;  %v110_v23 = vld [vmem:[#allocation6 + $0xa0] sm:$0xff]  ;;  %p789_p12 = scmp.ne.s32.totalorder %s438_s27, %s788_s3  ;;  %p794_p0 = scmp.lt.s32.totalorder %s788_s3, %s788_s3 }
  0x60   :  { %576 = vmatpush3.bf16.msra.mxu0 %v575_v8  ;;  %v609_v17 = vpack.c.bf16 %v141_v15, %v140_v14  ;;  %v93_v19 = vld [vmem:[#allocation6 + $0x18] sm:$0xff]  ;;  %v124_v20 = vld [vmem:[#allocation6 + $0x110] sm:$0xff]  ;;  %v111_v24 = vld [vmem:[#allocation6 + $0xa8] sm:$0xff]  ;;  %v161_v13 = vsub.s32 %v158_v63, %v160_v0 }
  0x61   :  { %608 = vmatpush3.bf16.msra.mxu1 %v607_v12  ;;  %v579_v21 = vpack.c.bf16 %v93_v19, %v92_v18  ;;  %v125_v22 = vld [vmem:[#allocation6 + $0x118] sm:$0xff]  ;;  %578 = vmatprep.subr.bf16.mxu0 %v577_v16  ;;  %v581_v26 = vpack.c.bf16 %v111_v24, %v110_v23  ;;  %v142_v27 = vld [vmem:[#allocation6 + $0x1a0] sm:$0xff]  ;;  %v143_v28 = vld [vmem:[#allocation6 + $0x1a8] sm:$0xff]  ;;  %p795_p1 = por %p794_p0, %p793_p13 }
  0x62   :  { %610 = vmatprep.subr.bf16.mxu1 %v609_v17  ;;  %v611_v25 = vpack.c.bf16 %v125_v22, %v124_v20  ;;  %v94_v29 = vld [vmem:[#allocation6 + $0x20] sm:$0xff]  ;;  %v613_v30 = vpack.c.bf16 %v143_v28, %v142_v27  ;;  %v95_v31 = vld [vmem:[#allocation6 + $0x28] sm:$0xff]  ;;  %v112_v35 = vld [vmem:[#allocation6 + $0xb0] sm:$0xff] }
  0x63   :  { %v126_v32 = vld [vmem:[#allocation6 + $0x120] sm:$0xff]  ;;  %v127_v33 = vld [vmem:[#allocation6 + $0x128] sm:$0xff]  ;;  %v583_v34 = vpack.c.bf16 %v95_v31, %v94_v29  ;;  %v113_v36 = vld [vmem:[#allocation6 + $0xb8] sm:$0xff]  ;;  %p796_p2 = pnand %p795_p1, %p789_p12 }
  0x64   :  { %580 = vmatpush3.bf16.msra.mxu0 %v579_v21  ;;  %v144_v37 = vld [vmem:[#allocation6 + $0x1b0] sm:$0xff]  ;;  %v615_v38 = vpack.c.bf16 %v127_v33, %v126_v32  ;;  %v585_v39 = vpack.c.bf16 %v113_v36, %v112_v35  ;;  %v145_v40 = vld [vmem:[#allocation6 + $0x1b8] sm:$0xff]  ;;  %v114_v46 = vld [vmem:[#allocation6 + $0xc0] sm:$0xff] }
  0x65   :  { %612 = vmatpush3.bf16.msra.mxu1 %v611_v25  ;;  %582 = vmatprep.subr.bf16.mxu0 %v581_v26  ;;  %v96_v41 = vld [vmem:[#allocation6 + $0x30] sm:$0xff]  ;;  %v97_v42 = vld [vmem:[#allocation6 + $0x38] sm:$0xff]  ;;  %v617_v43 = vpack.c.bf16 %v145_v40, %v144_v37  ;;  %v115_v50 = vld [vmem:[#allocation6 + $0xc8] sm:$0xff] }
  0x66   :  { %614 = vmatprep.subr.bf16.mxu1 %v613_v30  ;;  %v128_v44 = vld [vmem:[#allocation6 + $0x130] sm:$0xff]  ;;  %v129_v45 = vld [vmem:[#allocation6 + $0x138] sm:$0xff]  ;;  %v146_v51 = vld [vmem:[#allocation6 + $0x1c0] sm:$0xff]  ;;  %v587_v53 = vpack.c.bf16 %v97_v42, %v96_v41  ;;  %v589_v55 = vpack.c.bf16 %v115_v50, %v114_v46 }
  0x67   :  { %v147_v52 = vld [vmem:[#allocation6 + $0x1c8] sm:$0xff]  ;;  %v619_v54 = vpack.c.bf16 %v129_v45, %v128_v44  ;;  %v98_v56 = vld [vmem:[#allocation6 + $0x40] sm:$0xff]  ;;  %v116_v61 = vld [vmem:[#allocation6 + $0xd0] sm:$0xff] }
  0x68   :  { %584 = vmatpush3.bf16.msra.mxu0 %v583_v34  ;;  %v99_v57 = vld [vmem:[#allocation6 + $0x48] sm:$0xff]  ;;  %v130_v58 = vld [vmem:[#allocation6 + $0x140] sm:$0xff]  ;;  %v621_v59 = vpack.c.bf16 %v147_v52, %v146_v51  ;;  %v117_v62 = vld [vmem:[#allocation6 + $0xd8] sm:$0xff] }
  0x69   :  { %616 = vmatpush3.bf16.msra.mxu1 %v615_v38  ;;  %586 = vmatprep.subr.bf16.mxu0 %v585_v39  ;;  %v131_v60 = vld [vmem:[#allocation6 + $0x148] sm:$0xff]  ;;  %v148_v1 = vld [vmem:[#allocation6 + $0x1d0] sm:$0xff]  ;;  %v149_v2 = vld [vmem:[#allocation6 + $0x1d8] sm:$0xff]  ;;  %v591_v3 = vpack.c.bf16 %v99_v57, %v98_v56  ;;  %v593_v5 = vpack.c.bf16 %v117_v62, %v116_v61  ;;  %v827_v56 = vmov 0.0  }
  0x6a   :  { %618 = vmatprep.subr.bf16.mxu1 %v617_v43  ;;  %v623_v4 = vpack.c.bf16 %v131_v60, %v130_v58  ;;  %v100_v6 = vld [vmem:[#allocation6 + $0x50] sm:$0xff]  ;;  %v101_v7 = vld [vmem:[#allocation6 + $0x58] sm:$0xff]  ;;  %v625_v9 = vpack.c.bf16 %v149_v2, %v148_v1  ;;  %v118_v11 = vld [vmem:[#allocation6 + $0xe0] sm:$0xff]  ;;  %87 = vst [vmem:[#allocation2] sm:$0x3] %v827_v56 }
  0x6b   :  { %v132_v8 = vld [vmem:[#allocation6 + $0x150] sm:$0xff]  ;;  %v133_v10 = vld [vmem:[#allocation6 + $0x158] sm:$0xff]  ;;  %v119_v12 = vld [vmem:[#allocation6 + $0xe8] sm:$0xff]  ;;  %v595_v16 = vpack.c.bf16 %v101_v7, %v100_v6 }
  0x6c   :  { %588 = vmatpush3.bf16.msra.mxu0 %v587_v53  ;;  %v150_v14 = vld [vmem:[#allocation6 + $0x1e0] sm:$0xff]  ;;  %v151_v15 = vld [vmem:[#allocation6 + $0x1e8] sm:$0xff]  ;;  %v627_v18 = vpack.c.bf16 %v133_v10, %v132_v8  ;;  %v597_v19 = vpack.c.bf16 %v119_v12, %v118_v11  ;;  %v89_v22 = vld [vmem:[#allocation3] sm:$0xff] }
  0x6d   :  { %620 = vmatpush3.bf16.msra.mxu1 %v619_v54  ;;  %590 = vmatprep.subr.bf16.mxu0 %v589_v55  ;;  %v102_v17 = vld [vmem:[#allocation6 + $0x60] sm:$0xff]  ;;  %v103_v20 = vld [vmem:[#allocation6 + $0x68] sm:$0xff]  ;;  %v629_v23 = vpack.c.bf16 %v151_v15, %v150_v14  ;;  %v120_v25 = vld [vmem:[#allocation6 + $0xf0] sm:$0xff]  ;;  %v162_v27 = vrot.slane %v89_v22, %v161_v13  ;;  %v155_v28 = vcombine.high %v89_v22, %v89_v22 }
  0x6e   :  { %622 = vmatprep.subr.bf16.mxu1 %v621_v59  ;;  %v134_v21 = vld [vmem:[#allocation6 + $0x160] sm:$0xff]  ;;  %v135_v24 = vld [vmem:[#allocation6 + $0x168] sm:$0xff]  ;;  %v121_v26 = vld [vmem:[#allocation6 + $0xf8] sm:$0xff]  ;;  %v599_v31 = vpack.c.bf16 %v103_v20, %v102_v17 }
  0x6f   :  { %v152_v29 = vld [vmem:[#allocation6 + $0x1f0] sm:$0xff]  ;;  %v153_v30 = vld [vmem:[#allocation6 + $0x1f8] sm:$0xff]  ;;  %v170_v32 = vcombine.high %v162_v27, %v162_v27  ;;  %v169_v33 = vrot.slane %v155_v28, %v161_v13  ;;  %v631_v34 = vpack.c.bf16 %v135_v24, %v134_v21  ;;  %v601_v35 = vpack.c.bf16 %v121_v26, %v120_v25  ;;  %v331_v44 = vld [vmem:[#allocation9] sm:$0xff] }
  0x70   :  { %592 = vmatpush3.bf16.msra.mxu0 %v591_v3  ;;  %v104_v36 = vld [vmem:[#allocation6 + $0x70] sm:$0xff]  ;;  %v105_v37 = vld [vmem:[#allocation6 + $0x78] sm:$0xff]  ;;  %v633_v38 = vpack.c.bf16 %v153_v30, %v152_v29  ;;  %v335_v51 = vld [vmem:[#allocation9 + $0x20] sm:$0xff] }
  0x71   :  { %624 = vmatpush3.bf16.msra.mxu1 %v623_v4  ;;  %594 = vmatprep.subr.bf16.mxu0 %v593_v5  ;;  %v136_v39 = vld [vmem:[#allocation6 + $0x170] sm:$0xff]  ;;  %v137_v40 = vld [vmem:[#allocation6 + $0x178] sm:$0xff]  ;;  %v171_v41 = vcombine.high %v169_v33, %v169_v33  ;;  %v603_v42 = vpack.c.bf16 %v105_v37, %v104_v36  ;;  %v339_v58 = vld [vmem:[#allocation9 + $0x40] sm:$0xff] }
  0x72   :  { %626 = vmatprep.subr.bf16.mxu1 %v625_v9  ;;  %240 = vmatprep.mubr.f32.mxu0 %v170_v32  ;;  %v635_v43 = vpack.c.bf16 %v137_v40, %v136_v39  ;;  %v332_v45 = vld [vmem:[#allocation9 + $0x8] sm:$0xff]  ;;  %v333_v48 = vld [vmem:[#allocation9 + $0x10] sm:$0xff]  ;;  %v334_v49 = vld [vmem:[#allocation9 + $0x18] sm:$0xff] }
  0x73   :  { %310 = vmatprep.mubr.f32.mxu1 %v171_v41  ;;  %v638_v46 = vpack.c.bf16 %v332_v45, %v331_v44  ;;  %v641_v50 = vpack.c.bf16 %v334_v49, %v333_v48  ;;  %v336_v52 = vld [vmem:[#allocation9 + $0x28] sm:$0xff]  ;;  %v337_v54 = vld [vmem:[#allocation9 + $0x30] sm:$0xff]  ;;  %v338_v55 = vld [vmem:[#allocation9 + $0x38] sm:$0xff] }
  0x74   :  { %596 = vmatpush3.bf16.msra.mxu0 %v595_v16  ;;  %v644_v53 = vpack.c.bf16 %v336_v52, %v335_v51  ;;  %v647_v57 = vpack.c.bf16 %v338_v55, %v337_v54  ;;  %v340_v59 = vld [vmem:[#allocation9 + $0x48] sm:$0xff]  ;;  %v341_v61 = vld [vmem:[#allocation9 + $0x50] sm:$0xff]  ;;  %v342_v62 = vld [vmem:[#allocation9 + $0x58] sm:$0xff] }
  0x75   :  { %628 = vmatpush3.bf16.msra.mxu1 %v627_v18  ;;  %598 = vmatprep.subr.bf16.mxu0 %v597_v19  ;;  %v650_v60 = vpack.c.bf16 %v340_v59, %v339_v58  ;;  %v653_v63 = vpack.c.bf16 %v342_v62, %v341_v61  ;;  %v343_v0 = vld [vmem:[#allocation9 + $0x60] sm:$0xff]  ;;  %v344_v1 = vld [vmem:[#allocation9 + $0x68] sm:$0xff]  ;;  %v345_v3 = vld [vmem:[#allocation9 + $0x70] sm:$0xff] }
  0x76   :  { %630 = vmatprep.subr.bf16.mxu1 %v629_v23  ;;  %v656_v2 = vpack.c.bf16 %v344_v1, %v343_v0  ;;  %v346_v4 = vld [vmem:[#allocation9 + $0x78] sm:$0xff]  ;;  %v88_v12 = vld [vmem:[#allocation2] sm:$0x3]  ;;  %v449_v19 = vld [vmem:[#allocation11] ss:$0 sm:$0xff] }
  0x77   :  { %v659_v5 = vpack.c.bf16 %v346_v4, %v345_v3  ;;  %v448_v15 = vld [vmem:[#allocation8] ss:$0 sm:$0xff] }
  0x78   :  { %600 = vmatpush3.bf16.msra.mxu0 %v599_v31 }
  0x79   :  { %632 = vmatpush3.bf16.msra.mxu1 %v631_v34  ;;  %602 = vmatprep.subr.bf16.mxu0 %v601_v35 }
  0x7a   :  { %634 = vmatprep.subr.bf16.mxu1 %v633_v38 }
  0x7c   :  { %604 = vmatpush3.bf16.msra.mxu0 %v603_v42 }
  0x7d   :  { %636 = vmatpush3.bf16.msra.mxu1 %v635_v43  ;;  %637 = vmatprep.subr.bf16.mxu0 %v826_v47 }
  0x7f   :  { %241 = vmatmul.mubr.f32.vlgmr.msra.gmra.mrb[0].mxu0 %v162_v27 }
  0x80   :  { %311 = vmatmul.mubr.f32.vlgmr.msra.gmra.mrb[0].mxu1 %v169_v33  ;;  %639 = vmatpush3.bf16.msra.mxu0 %v638_v46 }
  0x81   :  { %640 = vmatprep.subr.bf16.mxu0 %v826_v47  ;;  %570 = vmatprep.mubr.msk.f32.mxu0 %vm828_vm0, %v827_v56 }
  0x84   :  { %642 = vmatpush3.bf16.msra.mxu0 %v641_v50 }
  0x85   :  { %643 = vmatprep.subr.bf16.mxu0 %v826_v47 }
  0x88   :  { %645 = vmatpush3.bf16.msra.mxu0 %v644_v53 }
  0x89   :  { %646 = vmatprep.subr.bf16.mxu0 %v826_v47 }
  0x8c   :  { %648 = vmatpush3.bf16.msra.mxu0 %v647_v57 }
  0x8d   :  { %649 = vmatprep.subr.bf16.mxu0 %v826_v47 }
  0x90   :  { %651 = vmatpush3.bf16.msra.mxu0 %v650_v60 }
  0x91   :  { %652 = vmatprep.subr.bf16.mxu0 %v826_v47 }
  0x94   :  { %654 = vmatpush3.bf16.msra.mxu0 %v653_v63 }
  0x95   :  { %655 = vmatprep.subr.bf16.mxu0 %v826_v47 }
  0x98   :  { %657 = vmatpush3.bf16.msra.mxu0 %v656_v2 }
  0x99   :  { %658 = vmatprep.subr.bf16.mxu0 %v826_v47 }
  0x9c   :  { %660 = vmatpush3.bf16.msra.mxu0 %v659_v5 }
 0x152   :  { %v483_v6 = vpop.f32.mrb[0].mxu0 }
 0x153   :  { %v518_v7 = vpop.f32.mrb[0].mxu1  ;;  %v484_v8 = vpop.f32.mrb[1].mxu0 }
 0x154   :  { %v485_v9 = vadd.f32 %v484_v8, %v483_v6  ;;  %v519_v10 = vpop.f32.mrb[1].mxu1 }
 0x155   :  { %v520_v11 = vadd.f32 %v519_v10, %v518_v7 }
 0x157   :  { %v313_v13 = vadd.f32 %v520_v11, %v485_v9 }
 0x159   :  { %v316_v14 = vadd.f32 %v313_v13, %v88_v12 }
 0x15b   :  { %317 = vst [vmem:[#allocation2] sm:$0x3] %v316_v14 }
 0x162   :  { %v321_v16 = vld [vmem:[#allocation2] sm:$0x3] }
 0x163   :  { %v329_v17 = vadd.f32 %v448_v15, %v321_v16 }
 0x165   :  { %v330_v18 = vmax.f32 %v329_v17, 0.0 }
 0x167   :  { %571 = vmatmul.mubr.f32.vlgmr.msra.gmra.mrb[2].mxu0 %v330_v18 }
 0x23a   :  { %v420_v20 = vpop.f32.mrb[2].mxu0 }
 0x23b   :  { %v421_v21 = vadd.f32 %v449_v19, %v420_v20  ;;  %v572_v22 = vpop.f32.mrb[3].mxu0 }
 0x23d   :  { %v450_v23 = vmul.f32 -1.442695, %v421_v21 }
 0x23f   :  { %674 = vpow2.f32 %v450_v23 }
 0x249   :  { %v675_v24 = vpop.eup %674 }
 0x24a   :  { %v427_v25 = vadd.f32 1.0, %v675_v24 }
 0x24c   :  { %676 = vrcp.f32 %v427_v25 }
 0x256   :  { %v677_v26 = vpop.eup %676 }
 0x257   :  { %430 = vst [vmem:[#allocation12] sm:$0x3] %v677_v26 }
 0x258   :  { %799 = shalt.err (!%p796_p2)
}
 0x259   :  { %s800_s30 = scalar_lea.hbm %s937_s5, 32 }
 0x25a   :  { %p801_p3 = scmp.ne.s32.totalorder %s937_s5, %s800_s30  ;;  %p804_p4 = scmp.lt.u32.totalorder %s800_s30, %s937_s5 }
 0x25c   :  { %p806_p5 = pnand %p804_p4, %p801_p3 }
 0x25e   :  { %809 = shalt.err (!%p806_p5)
}
 0x25f   :  { %440 = dma.vmem_to_hbm [thread:$0]  %s438_s27, 32, %s937_s5, [#allocation5]  }
 0x260   :  { %816 = dma.done.wait [#allocation5], 32  }
 0x261   :  { %817 = vsyncadd [#allocation5], 4294967264 }
 0x262   :  { %444 = vsyncpa [#allocation4], 1 }
 0x263   :  { %445 = vsyncpa [#allocation7], 1 }
 0x264   :  { %446 = vsyncpa [#allocation10], 1 }
 0x265   :  { %447 = vsyncpa [#allocation5], 1 }

</bundles_post_ra>
